<compile_context>
chip_gen: v7x
topology: tpu7x:2x2x1
jax: 0.10.0
libtpu: 0.0.40
codegen_flags: <defaults>
</compile_context>

<pallas_src>
from functools import partial

import jax
import jax.numpy as jnp
from jax.experimental import pallas as pl
from jax.experimental.pallas import tpu as pltpu

K = 3      # Conv1d kernel size
POOL = 3   # MaxPool1d kernel == stride


def _lstm1dcnn_kernel(x2_ref, w1_ref, t1_ref, w2_ref, t2_ref,
                      wih_ref, whh_ref, bl_ref, h0_ref, c0_ref,
                      wf1_ref, bf1_ref, wf2_ref, bf2_ref, wf3_ref, bf3_ref,
                      out_ref, *, n_steps):
    f32 = jnp.float32

    h = h0_ref[...]                                   # (TB, H)
    c = c0_ref[...]                                   # (TB, H)
    TB, H = h.shape

    x2 = x2_ref[...]                                  # (TB*P, 3*K*Cin)
    kc = w1_ref.shape[0]                              # K*Cin
    p_rows = x2.shape[0] // TB                        # P (multiple of 8)

    # ---- conv1 (+ folded BN) fused with pool1 ----------------------------
    # One matmul per pool phase w: rows are (batch, pooled-window) pairs, so
    # M = TB*P; ReLU/shift commute with the max so they are applied once.
    d = None
    for w in range(POOL):
        dw = jnp.dot(x2[:, w * kc:(w + 1) * kc], w1_ref[...],
                     preferred_element_type=f32)      # (TB*P, 16)
        d = dw if d is None else jnp.maximum(d, dw)
    p1 = jnp.maximum(d + t1_ref[...], 0.0)            # (TB*P, 16)

    # ---- conv2 taps as batch-folded matmuls -------------------------------
    # q_k[b, r, :] = p1[b, r, :] @ W2[k]; tile-aligned regroup to (TB, P, 32).
    cout2 = w2_ref.shape[-1]
    qs = []
    for k in range(K):
        qk = jnp.dot(p1, w2_ref[k], preferred_element_type=f32)   # (TB*P, 32)
        qs.append(qk.reshape(TB, p_rows, cout2))                   # (TB, P, 32)
    t2 = t2_ref[...]                                   # (1, 32)

    # ---- pool2 fused with the single-layer LSTM (fused gates) ------------
    wih = wih_ref[...]                                 # (32, 4H)  [i|f|g|o]
    whh = whh_ref[...]                                 # (H, 4H)
    bl = bl_ref[...]                                   # (1, 4H)
    for t in range(n_steps):                           # n_steps == 2 here
        # conv2 pre-activation rows of this pool window, then max / shift / ReLU
        # (shift & ReLU commute with the max).
        pre_rows = []
        for w in range(POOL):
            j = POOL * t + w
            pre_rows.append(qs[0][:, j, :] + qs[1][:, j + 1, :]
                            + qs[2][:, j + 2, :])      # (TB, 32)
        xt = jnp.maximum(jnp.maximum(pre_rows[0], pre_rows[1]), pre_rows[2])
        xt = jnp.maximum(xt + t2, 0.0)                 # (TB, 32)

        pre = (jnp.dot(xt, wih, preferred_element_type=f32)
               + jnp.dot(h, whh, preferred_element_type=f32)
               + bl)                                   # (TB, 4H=128)
        sg = jax.nn.sigmoid(pre)                       # full-width EUP eval
        th = jnp.tanh(pre)
        i_g = sg[:, 0:H]
        f_g = sg[:, H:2 * H]
        o_g = sg[:, 3 * H:4 * H]
        g_g = th[:, 2 * H:3 * H]
        c = f_g * c + i_g * g_g
        h = o_g * jnp.tanh(c)

    # ---- FC head (Dropout == identity at inference) ----------------------
    z = jnp.maximum(jnp.dot(h, wf1_ref[...], preferred_element_type=f32)
                    + bf1_ref[...], 0.0)
    z = jnp.maximum(jnp.dot(z, wf2_ref[...], preferred_element_type=f32)
                    + bf2_ref[...], 0.0)
    out_ref[...] = (jnp.dot(z, wf3_ref[...], preferred_element_type=f32)
                    + bf3_ref[...])                    # (TB, num_classes)


def _pick_batch_tile(B):
    """Multiple-of-8 tile with grid >= 2 for large B (v7x: 2 TensorCores)."""
    if B < 16 or B % 8 != 0:
        return B
    for tb in (256, 128, 64, 32, 16, 8):
        if B % tb == 0 and tb <= B // 2:
            return tb
    return B


def lstm1dcnn_forward(x, params, h0, c0, *, batch_tile=None):
    """x: (B, L, Cin); h0/c0: (B, H); returns (B, num_classes) logits."""
    B, L, Cin = x.shape
    H = h0.shape[-1]
    NC = params['wf3'].shape[-1]
    KCin = K * Cin

    Lo1 = L - K + 1            # conv1 output length
    Lp1 = Lo1 // POOL          # pool1 output length
    Lo2 = Lp1 - K + 1          # conv2 output length
    T = Lo2 // POOL            # LSTM steps after pool2
    assert T >= 1, "sequence too short for the conv/pool stack"
    P = POOL * T + K - 1       # pool1 rows that actually reach the output
    P_pad = ((P + 7) // 8) * 8  # keep in-kernel sublane regroups tile-aligned

    # Host-side im2col + pool1-window packing (free XLA data movement; the
    # kernel's input DMA becomes lane-dense: 4 -> 36 lanes per row).
    xim = jnp.concatenate([x[:, k:k + Lo1, :] for k in range(K)], axis=-1)  # (B, Lo1, K*Cin)
    win = xim[:, :POOL * P, :].reshape(B, P, POOL * KCin)                   # (B, P, 36)
    if P_pad > P:
        win = jnp.concatenate(
            [win, jnp.zeros((B, P_pad - P, POOL * KCin), win.dtype)], axis=1)
    x2d = win.reshape(B * P_pad, POOL * KCin)                               # (B*P_pad, 36)

    w1p = params['w1'].reshape(KCin, params['w1'].shape[-1])                # (K*Cin, 16)

    TB = _pick_batch_tile(B) if batch_tile is None else batch_tile
    assert B % TB == 0 and (TB == B or TB % 8 == 0), \
        "batch_tile must divide B and be a multiple of 8 (or equal B)"

    args = (x2d, w1p, params['t1'], params['w2'], params['t2'],
            params['wih'], params['whh'], params['bl'], h0, c0,
            params['wf1'], params['bf1'], params['wf2'], params['bf2'],
            params['wf3'], params['bf3'])

    def full_spec(a):
        nd = a.ndim
        return pl.BlockSpec(a.shape, lambda b, nd=nd: (0,) * nd)

    in_specs = [pl.BlockSpec((TB * P_pad, POOL * KCin), lambda b: (b, 0))]
    in_specs += [full_spec(a) for a in args[1:8]]
    in_specs += [pl.BlockSpec((TB, H), lambda b: (b, 0)),
                 pl.BlockSpec((TB, H), lambda b: (b, 0))]
    in_specs += [full_spec(a) for a in args[10:]]

    return pl.pallas_call(
        partial(_lstm1dcnn_kernel, n_steps=T),
        grid=(B // TB,),
        in_specs=in_specs,
        out_specs=pl.BlockSpec((TB, NC), lambda b: (b, 0)),
        out_shape=jax.ShapeDtypeStruct((B, NC), jnp.float32),
        compiler_params=pltpu.CompilerParams(dimension_semantics=("parallel",)),
    )(*args)


def init_params(key, input_size=4, hidden=32, num_classes=3):
    ks = jax.random.split(key, 22)
    eps = 1e-5

    def nrm(k, shape, scale=0.1):
        return scale * jax.random.normal(k, shape, dtype=jnp.float32)

    # conv1 (torch layout (Cout, Cin, K)) + BatchNorm1d(16), eval-mode folding:
    # BN scale folded into the weights, only a per-channel shift remains.
    w1_t = nrm(ks[0], (16, input_size, 3)); b1 = nrm(ks[1], (16,))
    g1 = 1.0 + nrm(ks[2], (16,)); be1 = nrm(ks[3], (16,))
    m1 = nrm(ks[4], (16,)); v1 = 1.0 + 0.1 * jnp.abs(jax.random.normal(ks[5], (16,)))
    s1 = g1 / jnp.sqrt(v1 + eps)
    w1 = jnp.transpose(w1_t, (2, 1, 0)) * s1            # (K, Cin, 16), scale-folded
    t1 = ((b1 - m1) * s1 + be1).reshape(1, 16)

    # conv2 + BatchNorm1d(32) folded
    w2_t = nrm(ks[6], (32, 16, 3)); b2 = nrm(ks[7], (32,))
    g2 = 1.0 + nrm(ks[8], (32,)); be2 = nrm(ks[9], (32,))
    m2 = nrm(ks[10], (32,)); v2 = 1.0 + 0.1 * jnp.abs(jax.random.normal(ks[11], (32,)))
    s2 = g2 / jnp.sqrt(v2 + eps)
    w2 = jnp.transpose(w2_t, (2, 1, 0)) * s2             # (K, 16, 32)
    t2 = ((b2 - m2) * s2 + be2).reshape(1, 32)

    # single-layer LSTM: torch W_ih (4H, 32), W_hh (4H, H), gate order [i,f,g,o].
    H = hidden
    wih_t = nrm(ks[12], (4 * H, 32)); whh_t = nrm(ks[13], (4 * H, H))
    bih = nrm(ks[14], (4 * H,)); bhh = nrm(ks[15], (4 * H,))
    wih = wih_t.T                                        # (32, 4H)
    whh = whh_t.T                                        # (H, 4H)
    bl = (bih + bhh).reshape(1, 4 * H)

    # FC head: Linear(H,16) -> ReLU -> Linear(16,8) -> ReLU -> Linear(8,nc)
    wf1_t = nrm(ks[16], (16, H)); bf1 = nrm(ks[17], (16,))
    wf2_t = nrm(ks[18], (8, 16)); bf2 = nrm(ks[19], (8,))
    wf3_t = nrm(ks[20], (num_classes, 8)); bf3 = nrm(ks[21], (num_classes,))

    return dict(
        w1=w1, t1=t1, w2=w2, t2=t2,
        wih=wih, whh=whh, bl=bl,
        wf1=wf1_t.T, bf1=bf1.reshape(1, 16),
        wf2=wf2_t.T, bf2=bf2.reshape(1, 8),
        wf3=wf3_t.T, bf3=bf3.reshape(1, num_classes),
    )


def reference_forward(x, p, h0, c0):
    """Pure-JAX reference mirroring the PyTorch forward (eval mode)."""
    B = x.shape[0]

    def conv_bn_relu_pool(z, w, shift):
        Kk = w.shape[0]
        Lo = z.shape[1] - Kk + 1
        y = sum(jnp.einsum('blc,co->blo', z[:, k:k + Lo, :], w[k],
                           precision=jax.lax.Precision.HIGHEST) for k in range(Kk))
        y = jnp.maximum(y + shift, 0.0)
        Lp = Lo // POOL
        return jnp.max(y[:, :Lp * POOL, :].reshape(B, Lp, POOL, y.shape[-1]), axis=2)

    h1 = conv_bn_relu_pool(x, p['w1'], p['t1'])
    h2 = conv_bn_relu_pool(h1, p['w2'], p['t2'])

    H = h0.shape[-1]
    h, c = h0, c0
    for t in range(h2.shape[1]):
        pre = h2[:, t, :] @ p['wih'] + h @ p['whh'] + p['bl']
        i_g = jax.nn.sigmoid(pre[:, :H]); f_g = jax.nn.sigmoid(pre[:, H:2 * H])
        g_g = jnp.tanh(pre[:, 2 * H:3 * H]); o_g = jax.nn.sigmoid(pre[:, 3 * H:])
        c = f_g * c + i_g * g_g
        h = o_g * jnp.tanh(c)

    z = jnp.maximum(h @ p['wf1'] + p['bf1'], 0.0)
    z = jnp.maximum(z @ p['wf2'] + p['bf2'], 0.0)
    return z @ p['wf3'] + p['bf3']


if __name__ == "__main__":
    key = jax.random.PRNGKey(0)
    kx, kh, kc_, kp = jax.random.split(key, 4)

    # Module hyper-params: input_size=4, hidden_size1=32, num_layer=1,
    # num_classes=3, D=1. Sequence length L=32 survives two (conv k=3 ->
    # pool k=3) stages: 32 -> 30 -> 10 -> 8 -> 2 LSTM steps.
    B, L, input_size = 2, 32, 4
    hidden_size1, num_classes = 32, 3

    x = jax.random.normal(kx, (B, L, input_size), dtype=jnp.float32)
    # torch h0/c0 are randn of shape (D*num_layer, B, H); deterministic fp32 here.
    h0 = jax.random.normal(kh, (1, B, hidden_size1), dtype=jnp.float32)[0]
    c0 = jax.random.normal(kc_, (1, B, hidden_size1), dtype=jnp.float32)[0]

    params = init_params(kp, input_size, hidden_size1, num_classes)

    out = jax.block_until_ready(lstm1dcnn_forward(x, params, h0, c0))
    ref = jax.block_until_ready(reference_forward(x, params, h0, c0))

    assert out.shape == (B, num_classes)
    assert bool(jnp.all(jnp.isfinite(out)))
    assert jnp.allclose(out, ref, atol=1e-2, rtol=1e-2), (out, ref)

    # Larger batch exercises the multiple-of-8 batch tile (TB=8, grid=(2,))
    # so the "parallel" batch axis can spread across both v7x TensorCores.
    B2 = 16
    kx2, kh2, kc2 = jax.random.split(jax.random.PRNGKey(1), 3)
    x2 = jax.random.normal(kx2, (B2, L, input_size), dtype=jnp.float32)
    h02 = jax.random.normal(kh2, (B2, hidden_size1), dtype=jnp.float32)
    c02 = jax.random.normal(kc2, (B2, hidden_size1), dtype=jnp.float32)
    out2 = jax.block_until_ready(lstm1dcnn_forward(x2, params, h02, c02))
    ref2 = jax.block_until_ready(reference_forward(x2, params, h02, c02))
    assert jnp.allclose(out2, ref2, atol=1e-2, rtol=1e-2), (out2, ref2)

    print("KERNEL_OK")
</pallas_src>

<mosaic_0001>
module attributes {stable_mosaic.version = 11 : i64} {
  func.func @_lstm1dcnn_kernel(%arg0: i32, %arg1: memref<16x36xf32, #tpu.memory_space<vmem>>, %arg2: memref<12x16xf32, #tpu.memory_space<vmem>>, %arg3: memref<1x16xf32, #tpu.memory_space<vmem>>, %arg4: memref<3x16x32xf32, #tpu.memory_space<vmem>>, %arg5: memref<1x32xf32, #tpu.memory_space<vmem>>, %arg6: memref<32x128xf32, #tpu.memory_space<vmem>>, %arg7: memref<32x128xf32, #tpu.memory_space<vmem>>, %arg8: memref<1x128xf32, #tpu.memory_space<vmem>>, %arg9: memref<2x32xf32, #tpu.memory_space<vmem>>, %arg10: memref<2x32xf32, #tpu.memory_space<vmem>>, %arg11: memref<32x16xf32, #tpu.memory_space<vmem>>, %arg12: memref<1x16xf32, #tpu.memory_space<vmem>>, %arg13: memref<16x8xf32, #tpu.memory_space<vmem>>, %arg14: memref<1x8xf32, #tpu.memory_space<vmem>>, %arg15: memref<8x3xf32, #tpu.memory_space<vmem>>, %arg16: memref<1x3xf32, #tpu.memory_space<vmem>>, %arg17: memref<2x3xf32, #tpu.memory_space<vmem>>) attributes {dimension_semantics = [#tpu.dimension_semantics<parallel>], iteration_bounds = array<i64: 1>, scalar_prefetch = 0 : i64, scratch_operands = 0 : i64, tpu.core_type = #tpu.core_type<tc>, window_params = [{transform_indices = @transform_0, window_bounds = array<i64: 16, 36>}, {pipeline_mode = #tpu.pipeline_mode<synchronous>, transform_indices = @transform_1, window_bounds = array<i64: 12, 16>}, {pipeline_mode = #tpu.pipeline_mode<synchronous>, transform_indices = @transform_2, window_bounds = array<i64: 1, 16>}, {pipeline_mode = #tpu.pipeline_mode<synchronous>, transform_indices = @transform_3, window_bounds = array<i64: 3, 16, 32>}, {pipeline_mode = #tpu.pipeline_mode<synchronous>, transform_indices = @transform_4, window_bounds = array<i64: 1, 32>}, {pipeline_mode = #tpu.pipeline_mode<synchronous>, transform_indices = @transform_5, window_bounds = array<i64: 32, 128>}, {pipeline_mode = #tpu.pipeline_mode<synchronous>, transform_indices = @transform_6, window_bounds = array<i64: 32, 128>}, {pipeline_mode = #tpu.pipeline_mode<synchronous>, transform_indices = @transform_7, window_bounds = array<i64: 1, 128>}, {transform_indices = @transform_8, window_bounds = array<i64: 2, 32>}, {transform_indices = @transform_9, window_bounds = array<i64: 2, 32>}, {pipeline_mode = #tpu.pipeline_mode<synchronous>, transform_indices = @transform_10, window_bounds = array<i64: 32, 16>}, {pipeline_mode = #tpu.pipeline_mode<synchronous>, transform_indices = @transform_11, window_bounds = array<i64: 1, 16>}, {pipeline_mode = #tpu.pipeline_mode<synchronous>, transform_indices = @transform_12, window_bounds = array<i64: 16, 8>}, {pipeline_mode = #tpu.pipeline_mode<synchronous>, transform_indices = @transform_13, window_bounds = array<i64: 1, 8>}, {pipeline_mode = #tpu.pipeline_mode<synchronous>, transform_indices = @transform_14, window_bounds = array<i64: 8, 3>}, {pipeline_mode = #tpu.pipeline_mode<synchronous>, transform_indices = @transform_15, window_bounds = array<i64: 1, 3>}, {transform_indices = @transform_16, window_bounds = array<i64: 2, 3>}]} {
    %c0 = arith.constant 0 : index
    %c0_0 = arith.constant 0 : index
    %0 = vector.load %arg9[%c0, %c0_0] : memref<2x32xf32, #tpu.memory_space<vmem>>, vector<2x32xf32>
    %c0_1 = arith.constant 0 : index
    %c0_2 = arith.constant 0 : index
    %1 = vector.load %arg10[%c0_1, %c0_2] : memref<2x32xf32, #tpu.memory_space<vmem>>, vector<2x32xf32>
    %c0_3 = arith.constant 0 : index
    %c0_4 = arith.constant 0 : index
    %2 = vector.load %arg1[%c0_3, %c0_4] : memref<16x36xf32, #tpu.memory_space<vmem>>, vector<16x36xf32>
    %3 = vector.extract_strided_slice %2 {offsets = [0, 0], sizes = [16, 12], strides = [1, 1]} : vector<16x36xf32> to vector<16x12xf32>
    %c0_5 = arith.constant 0 : index
    %c0_6 = arith.constant 0 : index
    %4 = vector.load %arg2[%c0_5, %c0_6] : memref<12x16xf32, #tpu.memory_space<vmem>>, vector<12x16xf32>
    %cst = arith.constant dense<0.000000e+00> : vector<16x16xf32>
    %5 = tpu.matmul %3, %4, %cst {dimension_numbers = #tpu.dot_dimension_numbers<[1], [0], [0], [1], [0, 0, 1, 1], [], []>} : vector<16x12xf32>, vector<12x16xf32>, vector<16x16xf32> -> vector<16x16xf32>
    %6 = vector.extract_strided_slice %2 {offsets = [0, 12], sizes = [16, 12], strides = [1, 1]} : vector<16x36xf32> to vector<16x12xf32>
    %c0_7 = arith.constant 0 : index
    %c0_8 = arith.constant 0 : index
    %7 = vector.load %arg2[%c0_7, %c0_8] : memref<12x16xf32, #tpu.memory_space<vmem>>, vector<12x16xf32>
    %cst_9 = arith.constant dense<0.000000e+00> : vector<16x16xf32>
    %8 = tpu.matmul %6, %7, %cst_9 {dimension_numbers = #tpu.dot_dimension_numbers<[1], [0], [0], [1], [0, 0, 1, 1], [], []>} : vector<16x12xf32>, vector<12x16xf32>, vector<16x16xf32> -> vector<16x16xf32>
    %9 = arith.maximumf %5, %8 : vector<16x16xf32>
    %10 = vector.extract_strided_slice %2 {offsets = [0, 24], sizes = [16, 12], strides = [1, 1]} : vector<16x36xf32> to vector<16x12xf32>
    %c0_10 = arith.constant 0 : index
    %c0_11 = arith.constant 0 : index
    %11 = vector.load %arg2[%c0_10, %c0_11] : memref<12x16xf32, #tpu.memory_space<vmem>>, vector<12x16xf32>
    %cst_12 = arith.constant dense<0.000000e+00> : vector<16x16xf32>
    %12 = tpu.matmul %10, %11, %cst_12 {dimension_numbers = #tpu.dot_dimension_numbers<[1], [0], [0], [1], [0, 0, 1, 1], [], []>} : vector<16x12xf32>, vector<12x16xf32>, vector<16x16xf32> -> vector<16x16xf32>
    %13 = arith.maximumf %9, %12 : vector<16x16xf32>
    %c0_13 = arith.constant 0 : index
    %c0_14 = arith.constant 0 : index
    %14 = vector.load %arg3[%c0_13, %c0_14] : memref<1x16xf32, #tpu.memory_space<vmem>>, vector<1x16xf32>
    %15 = vector.broadcast %14 : vector<1x16xf32> to vector<16x16xf32>
    %16 = arith.addf %13, %15 : vector<16x16xf32>
    %cst_15 = arith.constant 0.000000e+00 : f32
    %17 = vector.broadcast %cst_15 : f32 to vector<16x16xf32>
    %18 = arith.maximumf %16, %17 : vector<16x16xf32>
    %c0_16 = arith.constant 0 : index
    %c0_17 = arith.constant 0 : index
    %c0_18 = arith.constant 0 : index
    %19 = vector.load %arg4[%c0_16, %c0_17, %c0_18] : memref<3x16x32xf32, #tpu.memory_space<vmem>>, vector<1x16x32xf32>
    %20 = vector.shape_cast %19 : vector<1x16x32xf32> to vector<16x32xf32>
    %cst_19 = arith.constant dense<0.000000e+00> : vector<16x32xf32>
    %21 = tpu.matmul %18, %20, %cst_19 {dimension_numbers = #tpu.dot_dimension_numbers<[1], [0], [0], [1], [0, 0, 1, 1], [], []>} : vector<16x16xf32>, vector<16x32xf32>, vector<16x32xf32> -> vector<16x32xf32>
    %22 = vector.shape_cast %21 : vector<16x32xf32> to vector<2x8x32xf32>
    %c1 = arith.constant 1 : index
    %c0_20 = arith.constant 0 : index
    %c0_21 = arith.constant 0 : index
    %23 = vector.load %arg4[%c1, %c0_20, %c0_21] : memref<3x16x32xf32, #tpu.memory_space<vmem>>, vector<1x16x32xf32>
    %24 = vector.shape_cast %23 : vector<1x16x32xf32> to vector<16x32xf32>
    %cst_22 = arith.constant dense<0.000000e+00> : vector<16x32xf32>
    %25 = tpu.matmul %18, %24, %cst_22 {dimension_numbers = #tpu.dot_dimension_numbers<[1], [0], [0], [1], [0, 0, 1, 1], [], []>} : vector<16x16xf32>, vector<16x32xf32>, vector<16x32xf32> -> vector<16x32xf32>
    %26 = vector.shape_cast %25 : vector<16x32xf32> to vector<2x8x32xf32>
    %c2 = arith.constant 2 : index
    %c0_23 = arith.constant 0 : index
    %c0_24 = arith.constant 0 : index
    %27 = vector.load %arg4[%c2, %c0_23, %c0_24] : memref<3x16x32xf32, #tpu.memory_space<vmem>>, vector<1x16x32xf32>
    %28 = vector.shape_cast %27 : vector<1x16x32xf32> to vector<16x32xf32>
    %cst_25 = arith.constant dense<0.000000e+00> : vector<16x32xf32>
    %29 = tpu.matmul %18, %28, %cst_25 {dimension_numbers = #tpu.dot_dimension_numbers<[1], [0], [0], [1], [0, 0, 1, 1], [], []>} : vector<16x16xf32>, vector<16x32xf32>, vector<16x32xf32> -> vector<16x32xf32>
    %30 = vector.shape_cast %29 : vector<16x32xf32> to vector<2x8x32xf32>
    %c0_26 = arith.constant 0 : index
    %c0_27 = arith.constant 0 : index
    %31 = vector.load %arg5[%c0_26, %c0_27] : memref<1x32xf32, #tpu.memory_space<vmem>>, vector<1x32xf32>
    %c0_28 = arith.constant 0 : index
    %c0_29 = arith.constant 0 : index
    %32 = vector.load %arg6[%c0_28, %c0_29] : memref<32x128xf32, #tpu.memory_space<vmem>>, vector<32x128xf32>
    %c0_30 = arith.constant 0 : index
    %c0_31 = arith.constant 0 : index
    %33 = vector.load %arg7[%c0_30, %c0_31] : memref<32x128xf32, #tpu.memory_space<vmem>>, vector<32x128xf32>
    %c0_32 = arith.constant 0 : index
    %c0_33 = arith.constant 0 : index
    %34 = vector.load %arg8[%c0_32, %c0_33] : memref<1x128xf32, #tpu.memory_space<vmem>>, vector<1x128xf32>
    %35 = vector.extract_strided_slice %22 {offsets = [0, 0, 0], sizes = [2, 1, 32], strides = [1, 1, 1]} : vector<2x8x32xf32> to vector<2x1x32xf32>
    %36 = vector.shape_cast %35 : vector<2x1x32xf32> to vector<2x32xf32>
    %37 = vector.extract_strided_slice %26 {offsets = [0, 1, 0], sizes = [2, 1, 32], strides = [1, 1, 1]} : vector<2x8x32xf32> to vector<2x1x32xf32>
    %38 = vector.shape_cast %37 : vector<2x1x32xf32> to vector<2x32xf32>
    %39 = arith.addf %36, %38 : vector<2x32xf32>
    %40 = vector.extract_strided_slice %30 {offsets = [0, 2, 0], sizes = [2, 1, 32], strides = [1, 1, 1]} : vector<2x8x32xf32> to vector<2x1x32xf32>
    %41 = vector.shape_cast %40 : vector<2x1x32xf32> to vector<2x32xf32>
    %42 = arith.addf %39, %41 : vector<2x32xf32>
    %43 = vector.extract_strided_slice %22 {offsets = [0, 1, 0], sizes = [2, 1, 32], strides = [1, 1, 1]} : vector<2x8x32xf32> to vector<2x1x32xf32>
    %44 = vector.shape_cast %43 : vector<2x1x32xf32> to vector<2x32xf32>
    %45 = vector.extract_strided_slice %26 {offsets = [0, 2, 0], sizes = [2, 1, 32], strides = [1, 1, 1]} : vector<2x8x32xf32> to vector<2x1x32xf32>
    %46 = vector.shape_cast %45 : vector<2x1x32xf32> to vector<2x32xf32>
    %47 = arith.addf %44, %46 : vector<2x32xf32>
    %48 = vector.extract_strided_slice %30 {offsets = [0, 3, 0], sizes = [2, 1, 32], strides = [1, 1, 1]} : vector<2x8x32xf32> to vector<2x1x32xf32>
    %49 = vector.shape_cast %48 : vector<2x1x32xf32> to vector<2x32xf32>
    %50 = arith.addf %47, %49 : vector<2x32xf32>
    %51 = vector.extract_strided_slice %22 {offsets = [0, 2, 0], sizes = [2, 1, 32], strides = [1, 1, 1]} : vector<2x8x32xf32> to vector<2x1x32xf32>
    %52 = vector.shape_cast %51 : vector<2x1x32xf32> to vector<2x32xf32>
    %53 = vector.extract_strided_slice %26 {offsets = [0, 3, 0], sizes = [2, 1, 32], strides = [1, 1, 1]} : vector<2x8x32xf32> to vector<2x1x32xf32>
    %54 = vector.shape_cast %53 : vector<2x1x32xf32> to vector<2x32xf32>
    %55 = arith.addf %52, %54 : vector<2x32xf32>
    %56 = vector.extract_strided_slice %30 {offsets = [0, 4, 0], sizes = [2, 1, 32], strides = [1, 1, 1]} : vector<2x8x32xf32> to vector<2x1x32xf32>
    %57 = vector.shape_cast %56 : vector<2x1x32xf32> to vector<2x32xf32>
    %58 = arith.addf %55, %57 : vector<2x32xf32>
    %59 = arith.maximumf %42, %50 : vector<2x32xf32>
    %60 = arith.maximumf %59, %58 : vector<2x32xf32>
    %61 = vector.broadcast %31 : vector<1x32xf32> to vector<2x32xf32>
    %62 = arith.addf %60, %61 : vector<2x32xf32>
    %cst_34 = arith.constant 0.000000e+00 : f32
    %63 = vector.broadcast %cst_34 : f32 to vector<2x32xf32>
    %64 = arith.maximumf %62, %63 : vector<2x32xf32>
    %cst_35 = arith.constant dense<0.000000e+00> : vector<2x128xf32>
    %65 = tpu.matmul %64, %32, %cst_35 {dimension_numbers = #tpu.dot_dimension_numbers<[1], [0], [0], [1], [0, 0, 1, 1], [], []>} : vector<2x32xf32>, vector<32x128xf32>, vector<2x128xf32> -> vector<2x128xf32>
    %cst_36 = arith.constant dense<0.000000e+00> : vector<2x128xf32>
    %66 = tpu.matmul %0, %33, %cst_36 {dimension_numbers = #tpu.dot_dimension_numbers<[1], [0], [0], [1], [0, 0, 1, 1], [], []>} : vector<2x32xf32>, vector<32x128xf32>, vector<2x128xf32> -> vector<2x128xf32>
    %67 = arith.addf %65, %66 : vector<2x128xf32>
    %68 = vector.broadcast %34 : vector<1x128xf32> to vector<2x128xf32>
    %69 = arith.addf %67, %68 : vector<2x128xf32>
    %70 = arith.negf %69 : vector<2x128xf32>
    %71 = math.exp %70 : vector<2x128xf32>
    %cst_37 = arith.constant 1.000000e+00 : f32
    %72 = vector.broadcast %cst_37 : f32 to vector<2x128xf32>
    %73 = arith.addf %72, %71 : vector<2x128xf32>
    %74 = arith.divf %72, %73 : vector<2x128xf32>
    %75 = math.tanh %69 : vector<2x128xf32>
    %76 = vector.extract_strided_slice %74 {offsets = [0, 0], sizes = [2, 32], strides = [1, 1]} : vector<2x128xf32> to vector<2x32xf32>
    %77 = vector.extract_strided_slice %74 {offsets = [0, 32], sizes = [2, 32], strides = [1, 1]} : vector<2x128xf32> to vector<2x32xf32>
    %78 = vector.extract_strided_slice %74 {offsets = [0, 96], sizes = [2, 32], strides = [1, 1]} : vector<2x128xf32> to vector<2x32xf32>
    %79 = vector.extract_strided_slice %75 {offsets = [0, 64], sizes = [2, 32], strides = [1, 1]} : vector<2x128xf32> to vector<2x32xf32>
    %80 = arith.mulf %77, %1 : vector<2x32xf32>
    %81 = arith.mulf %76, %79 : vector<2x32xf32>
    %82 = arith.addf %80, %81 : vector<2x32xf32>
    %83 = math.tanh %82 : vector<2x32xf32>
    %84 = arith.mulf %78, %83 : vector<2x32xf32>
    %85 = vector.extract_strided_slice %22 {offsets = [0, 3, 0], sizes = [2, 1, 32], strides = [1, 1, 1]} : vector<2x8x32xf32> to vector<2x1x32xf32>
    %86 = vector.shape_cast %85 : vector<2x1x32xf32> to vector<2x32xf32>
    %87 = vector.extract_strided_slice %26 {offsets = [0, 4, 0], sizes = [2, 1, 32], strides = [1, 1, 1]} : vector<2x8x32xf32> to vector<2x1x32xf32>
    %88 = vector.shape_cast %87 : vector<2x1x32xf32> to vector<2x32xf32>
    %89 = arith.addf %86, %88 : vector<2x32xf32>
    %90 = vector.extract_strided_slice %30 {offsets = [0, 5, 0], sizes = [2, 1, 32], strides = [1, 1, 1]} : vector<2x8x32xf32> to vector<2x1x32xf32>
    %91 = vector.shape_cast %90 : vector<2x1x32xf32> to vector<2x32xf32>
    %92 = arith.addf %89, %91 : vector<2x32xf32>
    %93 = vector.extract_strided_slice %22 {offsets = [0, 4, 0], sizes = [2, 1, 32], strides = [1, 1, 1]} : vector<2x8x32xf32> to vector<2x1x32xf32>
    %94 = vector.shape_cast %93 : vector<2x1x32xf32> to vector<2x32xf32>
    %95 = vector.extract_strided_slice %26 {offsets = [0, 5, 0], sizes = [2, 1, 32], strides = [1, 1, 1]} : vector<2x8x32xf32> to vector<2x1x32xf32>
    %96 = vector.shape_cast %95 : vector<2x1x32xf32> to vector<2x32xf32>
    %97 = arith.addf %94, %96 : vector<2x32xf32>
    %98 = vector.extract_strided_slice %30 {offsets = [0, 6, 0], sizes = [2, 1, 32], strides = [1, 1, 1]} : vector<2x8x32xf32> to vector<2x1x32xf32>
    %99 = vector.shape_cast %98 : vector<2x1x32xf32> to vector<2x32xf32>
    %100 = arith.addf %97, %99 : vector<2x32xf32>
    %101 = vector.extract_strided_slice %22 {offsets = [0, 5, 0], sizes = [2, 1, 32], strides = [1, 1, 1]} : vector<2x8x32xf32> to vector<2x1x32xf32>
    %102 = vector.shape_cast %101 : vector<2x1x32xf32> to vector<2x32xf32>
    %103 = vector.extract_strided_slice %26 {offsets = [0, 6, 0], sizes = [2, 1, 32], strides = [1, 1, 1]} : vector<2x8x32xf32> to vector<2x1x32xf32>
    %104 = vector.shape_cast %103 : vector<2x1x32xf32> to vector<2x32xf32>
    %105 = arith.addf %102, %104 : vector<2x32xf32>
    %106 = vector.extract_strided_slice %30 {offsets = [0, 7, 0], sizes = [2, 1, 32], strides = [1, 1, 1]} : vector<2x8x32xf32> to vector<2x1x32xf32>
    %107 = vector.shape_cast %106 : vector<2x1x32xf32> to vector<2x32xf32>
    %108 = arith.addf %105, %107 : vector<2x32xf32>
    %109 = arith.maximumf %92, %100 : vector<2x32xf32>
    %110 = arith.maximumf %109, %108 : vector<2x32xf32>
    %111 = vector.broadcast %31 : vector<1x32xf32> to vector<2x32xf32>
    %112 = arith.addf %110, %111 : vector<2x32xf32>
    %cst_38 = arith.constant 0.000000e+00 : f32
    %113 = vector.broadcast %cst_38 : f32 to vector<2x32xf32>
    %114 = arith.maximumf %112, %113 : vector<2x32xf32>
    %cst_39 = arith.constant dense<0.000000e+00> : vector<2x128xf32>
    %115 = tpu.matmul %114, %32, %cst_39 {dimension_numbers = #tpu.dot_dimension_numbers<[1], [0], [0], [1], [0, 0, 1, 1], [], []>} : vector<2x32xf32>, vector<32x128xf32>, vector<2x128xf32> -> vector<2x128xf32>
    %cst_40 = arith.constant dense<0.000000e+00> : vector<2x128xf32>
    %116 = tpu.matmul %84, %33, %cst_40 {dimension_numbers = #tpu.dot_dimension_numbers<[1], [0], [0], [1], [0, 0, 1, 1], [], []>} : vector<2x32xf32>, vector<32x128xf32>, vector<2x128xf32> -> vector<2x128xf32>
    %117 = arith.addf %115, %116 : vector<2x128xf32>
    %118 = vector.broadcast %34 : vector<1x128xf32> to vector<2x128xf32>
    %119 = arith.addf %117, %118 : vector<2x128xf32>
    %120 = arith.negf %119 : vector<2x128xf32>
    %121 = math.exp %120 : vector<2x128xf32>
    %cst_41 = arith.constant 1.000000e+00 : f32
    %122 = vector.broadcast %cst_41 : f32 to vector<2x128xf32>
    %123 = arith.addf %122, %121 : vector<2x128xf32>
    %124 = arith.divf %122, %123 : vector<2x128xf32>
    %125 = math.tanh %119 : vector<2x128xf32>
    %126 = vector.extract_strided_slice %124 {offsets = [0, 0], sizes = [2, 32], strides = [1, 1]} : vector<2x128xf32> to vector<2x32xf32>
    %127 = vector.extract_strided_slice %124 {offsets = [0, 32], sizes = [2, 32], strides = [1, 1]} : vector<2x128xf32> to vector<2x32xf32>
    %128 = vector.extract_strided_slice %124 {offsets = [0, 96], sizes = [2, 32], strides = [1, 1]} : vector<2x128xf32> to vector<2x32xf32>
    %129 = vector.extract_strided_slice %125 {offsets = [0, 64], sizes = [2, 32], strides = [1, 1]} : vector<2x128xf32> to vector<2x32xf32>
    %130 = arith.mulf %127, %82 : vector<2x32xf32>
    %131 = arith.mulf %126, %129 : vector<2x32xf32>
    %132 = arith.addf %130, %131 : vector<2x32xf32>
    %133 = math.tanh %132 : vector<2x32xf32>
    %134 = arith.mulf %128, %133 : vector<2x32xf32>
    %c0_42 = arith.constant 0 : index
    %c0_43 = arith.constant 0 : index
    %135 = vector.load %arg11[%c0_42, %c0_43] : memref<32x16xf32, #tpu.memory_space<vmem>>, vector<32x16xf32>
    %cst_44 = arith.constant dense<0.000000e+00> : vector<2x16xf32>
    %136 = tpu.matmul %134, %135, %cst_44 {dimension_numbers = #tpu.dot_dimension_numbers<[1], [0], [0], [1], [0, 0, 1, 1], [], []>} : vector<2x32xf32>, vector<32x16xf32>, vector<2x16xf32> -> vector<2x16xf32>
    %c0_45 = arith.constant 0 : index
    %c0_46 = arith.constant 0 : index
    %137 = vector.load %arg12[%c0_45, %c0_46] : memref<1x16xf32, #tpu.memory_space<vmem>>, vector<1x16xf32>
    %138 = vector.broadcast %137 : vector<1x16xf32> to vector<2x16xf32>
    %139 = arith.addf %136, %138 : vector<2x16xf32>
    %cst_47 = arith.constant 0.000000e+00 : f32
    %140 = vector.broadcast %cst_47 : f32 to vector<2x16xf32>
    %141 = arith.maximumf %139, %140 : vector<2x16xf32>
    %c0_48 = arith.constant 0 : index
    %c0_49 = arith.constant 0 : index
    %142 = vector.load %arg13[%c0_48, %c0_49] : memref<16x8xf32, #tpu.memory_space<vmem>>, vector<16x8xf32>
    %cst_50 = arith.constant dense<0.000000e+00> : vector<2x8xf32>
    %143 = tpu.matmul %141, %142, %cst_50 {dimension_numbers = #tpu.dot_dimension_numbers<[1], [0], [0], [1], [0, 0, 1, 1], [], []>} : vector<2x16xf32>, vector<16x8xf32>, vector<2x8xf32> -> vector<2x8xf32>
    %c0_51 = arith.constant 0 : index
    %c0_52 = arith.constant 0 : index
    %144 = vector.load %arg14[%c0_51, %c0_52] : memref<1x8xf32, #tpu.memory_space<vmem>>, vector<1x8xf32>
    %145 = vector.broadcast %144 : vector<1x8xf32> to vector<2x8xf32>
    %146 = arith.addf %143, %145 : vector<2x8xf32>
    %cst_53 = arith.constant 0.000000e+00 : f32
    %147 = vector.broadcast %cst_53 : f32 to vector<2x8xf32>
    %148 = arith.maximumf %146, %147 : vector<2x8xf32>
    %c0_54 = arith.constant 0 : index
    %c0_55 = arith.constant 0 : index
    %149 = vector.load %arg15[%c0_54, %c0_55] : memref<8x3xf32, #tpu.memory_space<vmem>>, vector<8x3xf32>
    %cst_56 = arith.constant dense<0.000000e+00> : vector<2x3xf32>
    %150 = tpu.matmul %148, %149, %cst_56 {dimension_numbers = #tpu.dot_dimension_numbers<[1], [0], [0], [1], [0, 0, 1, 1], [], []>} : vector<2x8xf32>, vector<8x3xf32>, vector<2x3xf32> -> vector<2x3xf32>
    %c0_57 = arith.constant 0 : index
    %c0_58 = arith.constant 0 : index
    %151 = vector.load %arg16[%c0_57, %c0_58] : memref<1x3xf32, #tpu.memory_space<vmem>>, vector<1x3xf32>
    %152 = vector.broadcast %151 : vector<1x3xf32> to vector<2x3xf32>
    %153 = arith.addf %150, %152 : vector<2x3xf32>
    %c0_59 = arith.constant 0 : index
    %c0_60 = arith.constant 0 : index
    %154 = vector.load %arg17[%c0_59, %c0_60] : memref<2x3xf32, #tpu.memory_space<vmem>>, vector<2x3xf32>
    tpu.vector_store %arg17[%c0_59, %c0_60], %153 {strides = array<i32>} : memref<2x3xf32, #tpu.memory_space<vmem>>, vector<2x3xf32>,
    return
  }
  func.func @transform_0(%arg0: i32) -> (i32, i32) {
    %c0_i32 = arith.constant 0 : i32
    %c0_i32_0 = arith.constant 0 : i32
    return %arg0, %c0_i32 : i32, i32
  }
  func.func @transform_1(%arg0: i32) -> (i32, i32) {
    %c0_i32 = arith.constant 0 : i32
    %c0_i32_0 = arith.constant 0 : i32
    %c0_i32_1 = arith.constant 0 : i32
    return %c0_i32, %c0_i32_0 : i32, i32
  }
  func.func @transform_2(%arg0: i32) -> (i32, i32) {
    %c0_i32 = arith.constant 0 : i32
    %c0_i32_0 = arith.constant 0 : i32
    %c0_i32_1 = arith.constant 0 : i32
    return %c0_i32, %c0_i32_0 : i32, i32
  }
  func.func @transform_3(%arg0: i32) -> (i32, i32, i32) {
    %c0_i32 = arith.constant 0 : i32
    %c0_i32_0 = arith.constant 0 : i32
    %c0_i32_1 = arith.constant 0 : i32
    %c0_i32_2 = arith.constant 0 : i32
    return %c0_i32, %c0_i32_0, %c0_i32_1 : i32, i32, i32
  }
  func.func @transform_4(%arg0: i32) -> (i32, i32) {
    %c0_i32 = arith.constant 0 : i32
    %c0_i32_0 = arith.constant 0 : i32
    %c0_i32_1 = arith.constant 0 : i32
    return %c0_i32, %c0_i32_0 : i32, i32
  }
  func.func @transform_5(%arg0: i32) -> (i32, i32) {
    %c0_i32 = arith.constant 0 : i32
    %c0_i32_0 = arith.constant 0 : i32
    %c0_i32_1 = arith.constant 0 : i32
    return %c0_i32, %c0_i32_0 : i32, i32
  }
  func.func @transform_6(%arg0: i32) -> (i32, i32) {
    %c0_i32 = arith.constant 0 : i32
    %c0_i32_0 = arith.constant 0 : i32
    %c0_i32_1 = arith.constant 0 : i32
    return %c0_i32, %c0_i32_0 : i32, i32
  }
  func.func @transform_7(%arg0: i32) -> (i32, i32) {
    %c0_i32 = arith.constant 0 : i32
    %c0_i32_0 = arith.constant 0 : i32
    %c0_i32_1 = arith.constant 0 : i32
    return %c0_i32, %c0_i32_0 : i32, i32
  }
  func.func @transform_8(%arg0: i32) -> (i32, i32) {
    %c0_i32 = arith.constant 0 : i32
    %c0_i32_0 = arith.constant 0 : i32
    return %arg0, %c0_i32 : i32, i32
  }
  func.func @transform_9(%arg0: i32) -> (i32, i32) {
    %c0_i32 = arith.constant 0 : i32
    %c0_i32_0 = arith.constant 0 : i32
    return %arg0, %c0_i32 : i32, i32
  }
  func.func @transform_10(%arg0: i32) -> (i32, i32) {
    %c0_i32 = arith.constant 0 : i32
    %c0_i32_0 = arith.constant 0 : i32
    %c0_i32_1 = arith.constant 0 : i32
    return %c0_i32, %c0_i32_0 : i32, i32
  }
  func.func @transform_11(%arg0: i32) -> (i32, i32) {
    %c0_i32 = arith.constant 0 : i32
    %c0_i32_0 = arith.constant 0 : i32
    %c0_i32_1 = arith.constant 0 : i32
    return %c0_i32, %c0_i32_0 : i32, i32
  }
  func.func @transform_12(%arg0: i32) -> (i32, i32) {
    %c0_i32 = arith.constant 0 : i32
    %c0_i32_0 = arith.constant 0 : i32
    %c0_i32_1 = arith.constant 0 : i32
    return %c0_i32, %c0_i32_0 : i32, i32
  }
  func.func @transform_13(%arg0: i32) -> (i32, i32) {
    %c0_i32 = arith.constant 0 : i32
    %c0_i32_0 = arith.constant 0 : i32
    %c0_i32_1 = arith.constant 0 : i32
    return %c0_i32, %c0_i32_0 : i32, i32
  }
  func.func @transform_14(%arg0: i32) -> (i32, i32) {
    %c0_i32 = arith.constant 0 : i32
    %c0_i32_0 = arith.constant 0 : i32
    %c0_i32_1 = arith.constant 0 : i32
    return %c0_i32, %c0_i32_0 : i32, i32
  }
  func.func @transform_15(%arg0: i32) -> (i32, i32) {
    %c0_i32 = arith.constant 0 : i32
    %c0_i32_0 = arith.constant 0 : i32
    %c0_i32_1 = arith.constant 0 : i32
    return %c0_i32, %c0_i32_0 : i32, i32
  }
  func.func @transform_16(%arg0: i32) -> (i32, i32) {
    %c0_i32 = arith.constant 0 : i32
    %c0_i32_0 = arith.constant 0 : i32
    return %arg0, %c0_i32 : i32, i32
  }
}

</mosaic_0001>

<bundles_post_ra>
// kernel: tpu_custom_call.1
= control target key start
LH: loop header
LB: loop body
LE: loop exit
PB: predicated region body
PF: predicated region fallthrough
CT: control target
= control target key end

     0   :  { %s2109_s0 = inlined_call_operand.hbm [shape: f32[16,36], index: 0, kind: input, shape index: {}]   ;;  %s2110_s1 = inlined_call_operand.hbm [shape: f32[12,16], index: 1, kind: input, shape index: {}]   ;;  %s2111_s2 = inlined_call_operand.hbm [shape: f32[1,16], index: 2, kind: input, shape index: {}]   ;;  %s2112_s3 = inlined_call_operand.vmem [shape: f32[3,16,32], index: 3, kind: input, shape index: {}]   ;;  %s2113_s4 = inlined_call_operand.hbm [shape: f32[1,32], index: 4, kind: input, shape index: {}]   ;;  %s2114_s5 = inlined_call_operand.vmem [shape: f32[32,128], index: 5, kind: input, shape index: {}]   ;;  %s2115_s6 = inlined_call_operand.hbm [shape: f32[32,128], index: 6, kind: input, shape index: {}]   ;;  %s2116_s7 = inlined_call_operand.hbm [shape: f32[1,128], index: 7, kind: input, shape index: {}]   ;;  %s2117_s8 = inlined_call_operand.vmem [shape: f32[2,32], index: 8, kind: input, shape index: {}]   ;;  %s2118_s9 = inlined_call_operand.vmem [shape: f32[2,32], index: 9, kind: input, shape index: {}]   ;;  %s2119_s10 = inlined_call_operand.vmem [shape: f32[32,16], index: 10, kind: input, shape index: {}]   ;;  %s2120_s11 = inlined_call_operand.vmem [shape: f32[1,16], index: 11, kind: input, shape index: {}]   ;;  %s2121_s12 = inlined_call_operand.vmem [shape: f32[16,8], index: 12, kind: input, shape index: {}]   ;;  %s2122_s13 = inlined_call_operand.vmem [shape: f32[1,8], index: 13, kind: input, shape index: {}]   ;;  %s2123_s14 = inlined_call_operand.vmem [shape: f32[8,3], index: 14, kind: input, shape index: {}]   ;;  %s2124_s15 = inlined_call_operand.vmem [shape: f32[1,3], index: 15, kind: input, shape index: {}]   ;;  %s2125_s16 = inlined_call_operand.hbm [shape: f32[2,3], index: 16, kind: output, shape index: {}]  }
   0x1   :  { %2129 = sst [smem:[#allocation19_spill]] %s2109_s0 }
   0x2   :  { %21 = vsyncpa [#allocation3], 0 }
   0x3   :  { %22 = vsyncpa [#allocation6], 0 }
   0x4   :  { %23 = vsyncpa [#allocation9], 0 }
   0x5   :  { %24 = vsyncpa [#allocation12], 0 }
   0x6   :  { %25 = vsyncpa [#allocation4], 0  ;;  %s1783_s21 = smov [#allocation5]   ;;  %s1784_s23 = smov [#allocation8]  }
   0x7   :  { %s43_s22 = sshll.u32 %s1783_s21, 4  ;;  %s68_s24 = sshll.u32 %s1784_s23, 4  ;;  %s44_s22 = int_to_ptr.vmem [resolvable:$true] %s43_s22  ;;  %s1885_s24 = int_to_ptr.vmem [resolvable:$true] %s68_s24 }
   0x8   :  { %s1619_s27 = scalar_lea.hbm %s2110_s1, 256 }
   0x9   :  { %p1620_p0 = scmp.ne.s32.totalorder %s2110_s1, %s1619_s27  ;;  %p1623_p1 = scmp.lt.u32.totalorder %s1619_s27, %s2110_s1 }
   0xb   :  { %p1625_p2 = pnand %p1623_p1, %p1620_p0 }
   0xd   :  { %1628 = shalt.err (!%p1625_p2)
}
   0xe   :  { %s1629_s17 = scalar_lea.vmem %s44_s22, 256  ;;  %p1634_p4 = scmp.lt.s32.totalorder %s44_s22, %s44_s22 }
   0xf   :  { %p1630_p3 = scmp.ne.s32.totalorder %s44_s22, %s1629_s17  ;;  %p1635_p5 = scmp.lt.s32.totalorder %s1629_s17, %s1629_s17 }
  0x11   :  { %p1636_p6 = por %p1635_p5, %p1634_p4 }
  0x13   :  { %p1637_p7 = pnand %p1636_p6, %p1630_p3 }
  0x15   :  { %1640 = shalt.err (!%p1637_p7)
}
  0x16   :  { %s2127_s18 = smov 128   ;;  %s1786_s19 = smov 8  }
  0x17   :  { %49 = dma.hbm_to_vmem [thread:$0]  %s2110_s1, 256, %s44_s22, [#allocation6], %s2127_s18, %s2127_s18, %s1786_s19  }
  0x18   :  { %s1641_s26 = scalar_lea.hbm %s2113_s4, 16 }
  0x19   :  { %p1642_p8 = scmp.ne.s32.totalorder %s2113_s4, %s1641_s26  ;;  %p1645_p9 = scmp.lt.u32.totalorder %s1641_s26, %s2113_s4 }
  0x1b   :  { %p1647_p10 = pnand %p1645_p9, %p1642_p8 }
  0x1d   :  { %1650 = shalt.err (!%p1647_p10)
}
  0x1e   :  { %s1651_s0 = scalar_lea.vmem %s1885_s24, 16  ;;  %s1655_s1 = scalar_lea.vmem %s1885_s24, 32 }
  0x1f   :  { %p1652_p11 = scmp.ne.s32.totalorder %s1885_s24, %s1651_s0  ;;  %p1656_p12 = scmp.lt.s32.totalorder %s1885_s24, %s1885_s24 }
  0x20   :  { %p1657_p13 = scmp.lt.s32.totalorder %s1655_s1, %s1651_s0 }
  0x22   :  { %p1658_p0 = por %p1657_p13, %p1656_p12 }
  0x24   :  { %p1659_p1 = pnand %p1658_p0, %p1652_p11 }
  0x26   :  { %1662 = shalt.err (!%p1659_p1)
}
  0x27   :  { %71 = dma.hbm_to_vmem [thread:$0]  %s2113_s4, 16, %s1885_s24, [#allocation9]  }
  0x28   :  { %s1787_s20 = smov [#allocation2]   ;;  %s1788_s23 = smov [#allocation7]  }
  0x29   :  { %s31_s21 = sshll.u32 %s1787_s20, 4  ;;  %s56_s25 = sshll.u32 %s1788_s23, 4  ;;  %s32_s21 = int_to_ptr.vmem [resolvable:$true] %s31_s21  ;;  %s57_s25 = int_to_ptr.vmem [resolvable:$true] %s56_s25 }
  0x2a   :  { %s2130_s28 = sld [smem:[#allocation19_spill]] }
  0x30   :  { %s1663_s29 = scalar_lea.hbm %s2130_s28, 256 }
  0x31   :  { %p1664_p2 = scmp.ne.s32.totalorder %s2130_s28, %s1663_s29  ;;  %p1667_p3 = scmp.lt.u32.totalorder %s1663_s29, %s2130_s28 }
  0x33   :  { %p1669_p4 = pnand %p1667_p3, %p1664_p2 }
  0x35   :  { %1672 = shalt.err (!%p1669_p4)
}
  0x36   :  { %s1673_s4 = scalar_lea.vmem %s32_s21, 256  ;;  %p1678_p6 = scmp.lt.s32.totalorder %s32_s21, %s32_s21 }
  0x37   :  { %p1674_p5 = scmp.ne.s32.totalorder %s32_s21, %s1673_s4  ;;  %p1679_p7 = scmp.lt.s32.totalorder %s1673_s4, %s1673_s4 }
  0x39   :  { %p1680_p8 = por %p1679_p7, %p1678_p6 }
  0x3b   :  { %p1681_p9 = pnand %p1680_p8, %p1674_p5 }
  0x3d   :  { %1684 = shalt.err (!%p1681_p9)
}
  0x3e   :  { %s2131_s24 = smov 128   ;;  %s1685_s18 = scalar_lea.hbm %s2111_s2, 16 }
  0x3f   :  { %37 = dma.hbm_to_vmem [thread:$0]  %s2130_s28, 256, %s32_s21, [#allocation3], %s2131_s24, %s2131_s24, %s1786_s19  }
  0x40   :  { %p1686_p10 = scmp.ne.s32.totalorder %s2111_s2, %s1685_s18  ;;  %p1689_p11 = scmp.lt.u32.totalorder %s1685_s18, %s2111_s2 }
  0x42   :  { %p1691_p12 = pnand %p1689_p11, %p1686_p10 }
  0x44   :  { %1694 = shalt.err (!%p1691_p12)
}
  0x45   :  { %s1695_s0 = scalar_lea.vmem %s57_s25, 16  ;;  %s1699_s1 = scalar_lea.vmem %s57_s25, 32 }
  0x46   :  { %p1696_p13 = scmp.ne.s32.totalorder %s57_s25, %s1695_s0  ;;  %p1700_p0 = scmp.lt.s32.totalorder %s57_s25, %s57_s25 }
  0x47   :  { %p1701_p1 = scmp.lt.s32.totalorder %s1699_s1, %s1695_s0 }
  0x49   :  { %p1702_p2 = por %p1701_p1, %p1700_p0 }
  0x4b   :  { %p1703_p3 = pnand %p1702_p2, %p1696_p13 }
  0x4d   :  { %1706 = shalt.err (!%p1703_p3)
}
  0x4e   :  { %59 = dma.hbm_to_vmem [thread:$0]  %s2111_s2, 16, %s57_s25, [#allocation6]  }
  0x4f   :  { %s1789_s4 = smov [#allocation10]   ;;  %s1790_s17 = smov [#allocation11]  }
  0x50   :  { %s79_s22 = sshll.u32 %s1789_s4, 4  ;;  %s92_s20 = sshll.u32 %s1790_s17, 4  ;;  %s80_s22 = int_to_ptr.vmem [resolvable:$true] %s79_s22  ;;  %s93_s20 = int_to_ptr.vmem [resolvable:$true] %s92_s20 }
  0x51   :  { %s1707_s26 = scalar_lea.hbm %s2115_s6, 512 }
  0x52   :  { %p1708_p4 = scmp.ne.s32.totalorder %s2115_s6, %s1707_s26  ;;  %p1711_p5 = scmp.lt.u32.totalorder %s1707_s26, %s2115_s6 }
  0x54   :  { %p1713_p6 = pnand %p1711_p5, %p1708_p4 }
  0x56   :  { %1716 = shalt.err (!%p1713_p6)
}
  0x57   :  { %s1717_s2 = scalar_lea.vmem %s80_s22, 512  ;;  %p1722_p8 = scmp.lt.s32.totalorder %s80_s22, %s80_s22 }
  0x58   :  { %p1718_p7 = scmp.ne.s32.totalorder %s80_s22, %s1717_s2  ;;  %p1723_p9 = scmp.lt.s32.totalorder %s1717_s2, %s1717_s2 }
  0x5a   :  { %p1724_p10 = por %p1723_p9, %p1722_p8 }
  0x5c   :  { %p1725_p11 = pnand %p1724_p10, %p1718_p7 }
  0x5e   :  { %1728 = shalt.err (!%p1725_p11)
}
  0x5f   :  { %85 = dma.hbm_to_vmem [thread:$0]  %s2115_s6, 512, %s80_s22, [#allocation9], %s2131_s24, %s2131_s24, %s1786_s19  }
  0x60   :  { %s1729_s4 = scalar_lea.hbm %s2116_s7, 16 }
  0x61   :  { %p1730_p12 = scmp.ne.s32.totalorder %s2116_s7, %s1729_s4  ;;  %p1733_p13 = scmp.lt.u32.totalorder %s1729_s4, %s2116_s7 }
  0x63   :  { %p1735_p0 = pnand %p1733_p13, %p1730_p12 }
  0x65   :  { %1738 = shalt.err (!%p1735_p0)
}
  0x66   :  { %s1739_s27 = scalar_lea.vmem %s93_s20, 16  ;;  %s1743_s29 = scalar_lea.vmem %s93_s20, 32 }
  0x67   :  { %p1740_p1 = scmp.ne.s32.totalorder %s93_s20, %s1739_s27  ;;  %p1744_p2 = scmp.lt.s32.totalorder %s93_s20, %s93_s20 }
  0x68   :  { %p1745_p3 = scmp.lt.s32.totalorder %s1743_s29, %s1739_s27 }
  0x6a   :  { %p1746_p4 = por %p1745_p3, %p1744_p2 }
  0x6c   :  { %p1747_p5 = pnand %p1746_p4, %p1740_p1 }
  0x6e   :  { %1750 = shalt.err (!%p1747_p5)
}
  0x6f   :  { %95 = dma.hbm_to_vmem [thread:$0]  %s2116_s7, 16, %s93_s20, [#allocation12]  }
  0x70   :  { %1773 = dma.done.wait [#allocation3], 256  }
  0x71   :  { %1774 = vsyncadd [#allocation3], 4294967040 }
  0x72   :  { %1775 = dma.done.wait [#allocation6], 272  }
  0x73   :  { %1776 = vsyncadd [#allocation6], 4294967024 }
  0x74   :  { %1777 = dma.done.wait [#allocation9], 528  }
  0x75   :  { %1778 = vsyncadd [#allocation9], 4294966768 }
  0x76   :  { %1779 = dma.done.wait [#allocation12], 16  }
  0x77   :  { %1780 = vsyncadd [#allocation12], 4294967280  ;;  %vm143_vm0 = vcmask 1043456   ;;  %vm136_vm1 = vcmask 97280   ;;  %v132_v0 = vld [vmem:[#allocation2] sm:$0xff]  ;;  %v134_v1 = vld [vmem:[#allocation5] sm:$0xff] }
  0x78   :  { %s1791_s24 = smov 116   ;;  %s1792_s22 = smov 104   ;;  %v135_v2 = vld [vmem:[#allocation5 + $0x8] sm:$0xf]  ;;  %vm1793_vm2 = vmmov 1   ;;  %v133_v3 = vld [vmem:[#allocation2 + $0x8] sm:$0xff]  ;;  %1418 = vmatprep.mubr.msk.f32.mxu0 %vm136_vm1, %v132_v0 }
  0x79   :  { %222 = vrot.lane.b32.xlu0 %v132_v0, %s1791_s24  ;;  %307 = vrot.lane.b32.xlu1 %v132_v0, %s1792_s22  ;;  %vm1524_vm3 = vmpackc.low %vm143_vm0, %vm1793_vm2  ;;  %v1523_v4 = vpack.c.bf16 %v135_v2, %v134_v1  ;;  %v403_v9 = vld [vmem:[%s2112_s3] sm:$0xff]  ;;  %v404_v10 = vld [vmem:[%s2112_s3 + $0x8] sm:$0xff]  ;;  %vm405_vm4 = vcmask 130048   ;;  %v1794_v38 = vmov 0.0|0.0   ;;  %vm1795_vm5 = vmmov 0   ;;  %s1797_s20 = smov 32  }
  0x7a   :  { %v1338_v11 = vld [vmem:[%s2112_s3 + $0x10] sm:$0xff]  ;;  %v1541_v12 = vpack.c.bf16 %v404_v10, %v403_v9  ;;  %v1339_v13 = vld [vmem:[%s2112_s3 + $0x18] sm:$0xff]  ;;  %v1342_v15 = vld [vmem:[%s2112_s3 + $0x20] sm:$0xff]  ;;  %v1796_v46 = vmov 0.0   ;;  %vm693_vm6 = vcmask 261120   ;;  %vm770_vm7 = vcmask 1041409  }
  0x7b   :  { %1525 = vmatprep.subr.msk.bf16.mxu0 %vm1524_vm3, %v1523_v4  ;;  %1531 = vmatprep.subr.msk.bf16.mxu1 %vm1524_vm3, %v1523_v4  ;;  %v1545_v14 = vpack.c.bf16 %v1339_v13, %v1338_v11  ;;  %v1343_v16 = vld [vmem:[%s2112_s3 + $0x28] sm:$0xff]  ;;  %v1335_v26 = vld [vmem:[#allocation7] ss:$0 sm:$0xff]  ;;  %v650_v40 = vld [vmem:[#allocation10 + $0x10] sm:$0xff]  ;;  %vm1232_vm8 = vcmask 64512   ;;  %vm1306_vm9 = vcmask 17408  }
  0x7c   :  { %1528 = vmatpush3.bf16.msk.msra.mxu0 %vm1524_vm3, %v1523_v4  ;;  %1534 = vmatpush3.bf16.msk.msra.mxu1 %vm1524_vm3, %v1523_v4  ;;  %v1549_v17 = vpack.c.bf16 %v1343_v16, %v1342_v15  ;;  %v648_v33 = vld [vmem:[#allocation10] sm:$0xff]  ;;  %v649_v34 = vld [vmem:[#allocation10 + $0x8] sm:$0xff]  ;;  %v651_v41 = vld [vmem:[#allocation10 + $0x18] sm:$0xff] }
  0x7d   :  { %224 = vrot.lane.b32.xlu0 %v133_v3, %s1791_s24  ;;  %309 = vrot.lane.b32.xlu1 %v133_v3, %s1792_s22  ;;  %v644_v35 = vld [vmem:[%s2114_s5] sm:$0xff]  ;;  %v1554_v36 = vpack.c.bf16 %v649_v34, %v648_v33  ;;  %v645_v37 = vld [vmem:[%s2114_s5 + $0x8] sm:$0xff]  ;;  %v1557_v43 = vpack.c.bf16 %v651_v41, %v650_v40  ;;  %s1799_s24 = smov [#allocation13]  }
  0x7e   :  { %1537 = vmatprep.subr.msk.bf16.mxu0 %vm1524_vm3, %v1523_v4  ;;  %1542 = vmatprep.subr.bf16.mxu1 %v1541_v12  ;;  %v2012_v39 = vpack.c.bf16 %v645_v37, %v644_v35  ;;  %v646_v42 = vld [vmem:[%s2114_s5 + $0x10] sm:$0xff]  ;;  %v647_v44 = vld [vmem:[%s2114_s5 + $0x18] sm:$0xff]  ;;  %v130_v47 = vld [vmem:[%s2117_s8] sm:$0x3]  ;;  %s1314_s22 = sshll.u32 %s1799_s24, 4  ;;  %s1315_s22 = int_to_ptr.vmem [resolvable:$true] %s1314_s22 }
  0x7f   :  { %1419 = vmatmul.mubr.msk.f32.vlgmr.msra.gmra.mrb[0].mxu0 %vm136_vm1, %v133_v3  ;;  %v1563_v45 = vpack.c.bf16 %v647_v44, %v646_v42  ;;  %v131_v48 = vld [vmem:[%s2118_s9] sm:$0x3]  ;;  %v1346_v3 = vld [vmem:[#allocation8] ss:$0 sm:$0xff]  ;;  %s1798_s9 = smov 64   ;;  %p1756_p7 = scmp.lt.s32.totalorder %s1315_s22, %s1315_s22 }
  0x80   :  { %1540 = vmatpush3.bf16.msk.msra.mxu0 %vm1524_vm3, %v1523_v4 }
  0x81   :  { %1546 = vmatprep.subr.bf16.mxu0 %v1545_v14  ;;  %859 = vrot.lane.b32.xlu1 %v131_v48, %s1797_s20 }
  0xeb   :  { %v223_v5 = vpop.permute.xlu0 %222  ;;  %v308_v6 = vpop.permute.xlu1 %307 }
  0xec   :  { %1425 = vmatprep.mubr.msk.f32.mxu1 %vm136_vm1, %v223_v5  ;;  %1432 = vmatprep.mubr.msk.f32.mxu0 %vm136_vm1, %v308_v6 }
  0xef   :  { %v225_v7 = vpop.permute.xlu0 %224  ;;  %v310_v8 = vpop.permute.xlu1 %309 }
  0xf0   :  { %1426 = vmatmul.mubr.msk.f32.vlgmr.msra.gmra.mrb[0].mxu1 %vm136_vm1, %v225_v7  ;;  %1433 = vmatmul.mubr.msk.f32.vlgmr.msra.gmra.mrb[2].mxu0 %vm136_vm1, %v310_v8 }
  0xf1   :  { %1544 = vmatpush3.bf16.msra.mxu1 %v1541_v12  ;;  %1548 = vmatpush3.bf16.msra.mxu0 %v1545_v14 }
  0xf2   :  { %1550 = vmatprep.subr.bf16.mxu1 %v1549_v17  ;;  %1553 = vmatprep.subr.bf16.mxu0 %v1794_v38 }
  0xf3   :  { %v860_v33 = vpop.permute.xlu1 %859 }
 0x152   :  { %v1420_v18 = vpop.f32.mrb[0].mxu0 }
 0x153   :  { %v213_v19 = vpop.f32.mrb[1].mxu0 }
 0x1c3   :  { %v1427_v20 = vpop.f32.mrb[0].mxu1  ;;  %v1434_v21 = vpop.f32.mrb[2].mxu0 }
 0x1c4   :  { %v306_v22 = vmax.f32 %v1420_v18, %v1427_v20  ;;  %v296_v23 = vpop.f32.mrb[1].mxu1  ;;  %v381_v24 = vpop.f32.mrb[3].mxu0 }
 0x1c5   :  { %v305_v25 = vmax.f32 %v213_v19, %v296_v23  ;;  %v1349_v19 = vld [vmem:[#allocation11] ss:$0 sm:$0xff] }
 0x1c6   :  { %v391_v27 = vmax.f32 %v306_v22, %v1434_v21 }
 0x1c7   :  { %v390_v28 = vmax.f32 %v305_v25, %v381_v24 }
 0x1c8   :  { %v400_v29 = vadd.f32 %v1335_v26, %v391_v27 }
 0x1c9   :  { %v399_v30 = vadd.f32 %v1335_v26, %v390_v28 }
 0x1ca   :  { %v402_v32 = vmax.f32 %v400_v29, 0.0 }
 0x1cb   :  { %v401_v31 = vmax.f32 %v399_v30, 0.0 }
 0x1cd   :  { %1439 = vmatprep.mubr.msk.f32.mxu1 %vm405_vm4, %v401_v31  ;;  %1446 = vmatprep.mubr.msk.f32.mxu0 %vm405_vm4, %v401_v31 }
 0x1ce   :  { %1440 = vmatmul.mubr.msk.f32.vlgmr.msra.gmra.mrb[2].mxu1 %vm405_vm4, %v402_v32  ;;  %1447 = vmatmul.mubr.msk.f32.vlgmr.msra.gmra.mrb[4].mxu0 %vm405_vm4, %v402_v32 }
 0x1cf   :  { %1552 = vmatpush3.bf16.msra.mxu1 %v1549_v17  ;;  %1453 = vmatprep.mubr.msk.f32.mxu1 %vm405_vm4, %v401_v31 }
 0x1d0   :  { %1559 = vmatprep.subr.bf16.mxu1 %v1794_v38  ;;  %1555 = vmatpush3.bf16.msra.mxu0 %v1554_v36 }
 0x1d1   :  { %1556 = vmatprep.subr.bf16.mxu0 %v1794_v38  ;;  %1464 = vmatprep.mubr.msk.f32.mxu0 %vm1795_vm5, %v1796_v46 }
 0x1d2   :  { %1454 = vmatmul.mubr.msk.f32.vlgmr.msra.gmra.mrb[4].mxu1 %vm405_vm4, %v402_v32 }
 0x1d3   :  { %1561 = vmatpush3.bf16.msra.mxu1 %v2012_v39  ;;  %1475 = vmatprep.mubr.msk.f32.mxu1 %vm1795_vm5, %v1796_v46 }
 0x1d4   :  { %1562 = vmatprep.subr.bf16.mxu1 %v1794_v38  ;;  %1558 = vmatpush3.bf16.msra.mxu0 %v1557_v43 }
 0x1d5   :  { %1565 = vmatprep.subr.bf16.mxu0 %v1794_v38 }
 0x1d7   :  { %1564 = vmatpush3.bf16.msra.mxu1 %v1563_v45  ;;  %1465 = vmatmul.mubr.msk.f32.vlgmr.msra.gmra.mrb[6].mxu0 %vm693_vm6, %v130_v47 }
 0x1d8   :  { %1571 = vmatprep.subr.bf16.mxu1 %v1794_v38  ;;  %1567 = vmatpush3.bf16.msra.mxu0 %v1554_v36 }
 0x1d9   :  { %1486 = vmatprep.mubr.msk.f32.mxu0 %vm1795_vm5, %v1796_v46  ;;  %1568 = vmatprep.subr.bf16.mxu0 %v1794_v38 }
 0x1dc   :  { %1570 = vmatpush3.bf16.msra.mxu0 %v1557_v43 }
 0x1dd   :  { %1577 = vmatprep.subr.bf16.mxu0 %v1794_v38 }
 0x2a1   :  { %v1441_v49 = vpop.f32.mrb[2].mxu1  ;;  %v1448_v50 = vpop.f32.mrb[4].mxu0 }
 0x2a2   :  { %v656_v51 = vrot.slane %v1448_v50, 1  ;;  %v478_v52 = vpop.f32.mrb[3].mxu1  ;;  %v556_v53 = vpop.f32.mrb[5].mxu0 }
 0x2a3   :  { %v655_v54 = vrot.slane %v556_v53, 1 }
 0x2a4   :  { %v660_v55 = vadd.f32 %v1441_v49, %v656_v51 }
 0x2a5   :  { %v659_v56 = vadd.f32 %v655_v54, %v478_v52  ;;  %v1455_v57 = vpop.f32.mrb[4].mxu1 }
 0x2a6   :  { %v664_v58 = vrot.slane %v1455_v57, 2  ;;  %v634_v59 = vpop.f32.mrb[5].mxu1  ;;  %v1054_v57 = vld [vmem:[%s2119_s10] sm:$0xff] }
 0x2a7   :  { %v663_v60 = vrot.slane %v634_v59, 2  ;;  %v1056_v59 = vld [vmem:[%s2119_s10 + $0x10] sm:$0xff] }
 0x2a8   :  { %v668_v61 = vadd.f32 %v664_v58, %v660_v55  ;;  %v1055_v58 = vld [vmem:[%s2119_s10 + $0x8] sm:$0xff] }
 0x2a9   :  { %v667_v62 = vadd.f32 %v663_v60, %v659_v56  ;;  %v1578_v60 = vpack.c.bf16 %v1055_v58, %v1054_v57 }
 0x2aa   :  { %v672_v63 = vrot.slane %v668_v61, 1  ;;  %v678_v2 = vrot.slane %v668_v61, 2  ;;  %v763_v17 = vpop.f32.mrb[6].mxu0 }
 0x2ab   :  { %v671_v0 = vrot.slane %v667_v62, 1  ;;  %v677_v5 = vrot.slane %v667_v62, 2  ;;  %v1466_v18 = vpop.f32.mrb[7].mxu0 }
 0x2ac   :  { %v676_v1 = vmax.f32 %v668_v61, %v672_v63  ;;  %v1057_v61 = vld [vmem:[%s2119_s10 + $0x18] sm:$0xff] }
 0x2ad   :  { %v675_v4 = vmax.f32 %v667_v62, %v671_v0  ;;  %v1581_v62 = vpack.c.bf16 %v1057_v61, %v1056_v59 }
 0x2ae   :  { %v682_v6 = vmax.f32 %v676_v1, %v678_v2 }
 0x2af   :  { %v681_v7 = vmax.f32 %v675_v4, %v677_v5  ;;  %v1142_v4 = vld [vmem:[%s2121_s12 + $0x8] sm:$0xff]  ;;  %v1354_v5 = vld [vmem:[%s2120_s11] ss:$0 sm:$0xff] }
 0x2b0   :  { %v690_v8 = vadd.f32 %v1346_v3, %v682_v6 }
 0x2b1   :  { %v689_v9 = vadd.f32 %v1346_v3, %v681_v7  ;;  %v1141_v3 = vld [vmem:[%s2121_s12] sm:$0xff] }
 0x2b2   :  { %v692_v10 = vmax.f32 %v690_v8, 0.0 }
 0x2b3   :  { %v691_v11 = vmax.f32 %v689_v9, 0.0 }
 0x2b4   :  { %v769_v12 = vrot.slane %v692_v10, 7  ;;  %v955_v13 = vrot.slane %v692_v10, 2  ;;  %v1224_v10 = vld [vmem:[%s2123_s14] sm:$0xff]  ;;  %s1751_s14 = scalar_lea.vmem %s1315_s22, 32 }
 0x2b5   :  { %v954_v14 = vrot.slane %v691_v11, 3  ;;  %p1752_p6 = scmp.ne.s32.totalorder %s1315_s22, %s1751_s14  ;;  %p1757_p8 = scmp.lt.s32.totalorder %s1751_s14, %s1751_s14 }
 0x2b6   :  { %v771_v15 = vsel %vm770_vm7, %v769_v12, %v691_v11  ;;  %v1356_v11 = vld [vmem:[%s2122_s13] ss:$0 sm:$0xff] }
 0x2b7   :  { %1476 = vmatmul.mubr.msk.f32.vlgmr.msra.gmra.mrb[6].mxu1 %vm693_vm6, %v771_v15  ;;  %v956_v16 = vsel %vm770_vm7, %v955_v13, %v954_v14  ;;  %p1758_p9 = por %p1757_p8, %p1756_p7 }
 0x2b8   :  { %1573 = vmatpush3.bf16.msra.mxu1 %v2012_v39  ;;  %1497 = vmatprep.mubr.msk.f32.mxu1 %vm1795_vm5, %v1796_v46 }
 0x2b9   :  { %1574 = vmatprep.subr.bf16.mxu1 %v1794_v38  ;;  %p1759_p10 = pnand %p1758_p9, %p1752_p6 }
 0x2bc   :  { %1576 = vmatpush3.bf16.msra.mxu1 %v1563_v45 }
 0x2bd   :  { %1583 = vmatprep.subr.bf16.mxu1 %v1794_v38 }
 0x2bf   :  { %1498 = vmatmul.mubr.msk.f32.vlgmr.msra.gmra.mrb[8].mxu1 %vm693_vm6, %v956_v16  ;;  %v1358_v16 = vld [vmem:[%s2124_s15] ss:$0 sm:$0xff] }
 0x2c0   :  { %1515 = vmatprep.mubr.msk.f32.mxu1 %vm1795_vm5, %v1796_v46 }
 0x38a   :  { %v840_v20 = vpop.f32.mrb[6].mxu1 }
 0x38b   :  { %v841_v21 = vadd.f32 %v840_v20, %v763_v17  ;;  %v1477_v22 = vpop.f32.mrb[7].mxu1 }
 0x38d   :  { %v850_v23 = vadd.f32 %v1349_v19, %v841_v21 }
 0x38f   :  { %1603 = vtanh.f32 %v850_v23  ;;  %v1350_v27 = vmul.f32 -1.442695, %v850_v23 }
 0x391   :  { %1605 = vpow2.f32 %v1350_v27 }
 0x392   :  { %v1025_v24 = vpop.f32.mrb[8].mxu1 }
 0x393   :  { %v1499_v25 = vpop.f32.mrb[9].mxu1 }
 0x399   :  { %v1604_v26 = vpop.eup %1603 }
 0x39a   :  { %864 = vrot.lane.b32.xlu0 %v1604_v26, %s1798_s9 }
 0x39b   :  { %v1606_v28 = vpop.eup %1605 }
 0x39c   :  { %v854_v29 = vadd.f32 1.0, %v1606_v28 }
 0x39e   :  { %1607 = vrcp.f32 %v854_v29 }
 0x3a8   :  { %v1608_v30 = vpop.eup %1607 }
 0x3a9   :  { %v862_v34 = vmul.f32 %v1608_v30, %v860_v33 }
 0x40c   :  { %v865_v31 = vpop.permute.xlu0 %864 }
 0x40d   :  { %v867_v32 = vmul.f32 %v1608_v30, %v865_v31 }
 0x40f   :  { %869 = vrot.lane.b32.xlu0 %v867_v32, %s1797_s20 }
 0x481   :  { %v870_v35 = vpop.permute.xlu0 %869 }
 0x482   :  { %v872_v36 = vadd.f32 %v870_v35, %v862_v34 }
 0x484   :  { %1609 = vtanh.f32 %v872_v36 }
 0x48e   :  { %v1610_v37 = vpop.eup %1609 }
 0x48f   :  { %875 = vrot.lane.b32.xlu1 %v1610_v37, %s1798_s9 }
 0x501   :  { %v876_v39 = vpop.permute.xlu1 %875 }
 0x502   :  { %v878_v40 = vmul.f32 %v1608_v30, %v876_v39 }
 0x504   :  { %880 = vrot.lane.b32.xlu0 %v878_v40, %s1797_s20 }
 0x576   :  { %v881_v41 = vpop.permute.xlu0 %880 }
 0x577   :  { %1487 = vmatmul.mubr.msk.f32.vlgmr.msra.gmra.mrb[8].mxu0 %vm693_vm6, %v881_v41 }
 0x578   :  { %1508 = vmatprep.mubr.msk.f32.mxu0 %vm1795_vm5, %v1796_v46  ;;  %1579 = vmatpush3.bf16.msra.mxu0 %v1578_v60 }
 0x579   :  { %1580 = vmatprep.subr.bf16.mxu0 %v1794_v38  ;;  %v1584_v38 = vpack.c.bf16 %v1142_v4, %v1141_v3 }
 0x57b   :  { %1585 = vmatpush3.bf16.msra.mxu1 %v1584_v38 }
 0x57c   :  { %1582 = vmatpush3.bf16.msra.mxu0 %v1581_v62  ;;  %1518 = vmatprep.subr.mxu1 %v1796_v46 }
 0x64a   :  { %v950_v42 = vpop.f32.mrb[8].mxu0 }
 0x64b   :  { %v1026_v43 = vadd.f32 %v1025_v24, %v950_v42  ;;  %v1488_v44 = vpop.f32.mrb[9].mxu0 }
 0x64d   :  { %v1029_v45 = vadd.f32 %v1349_v19, %v1026_v43 }
 0x64f   :  { %1611 = vtanh.f32 %v1029_v45  ;;  %v1353_v48 = vmul.f32 -1.442695, %v1029_v45 }
 0x651   :  { %1613 = vpow2.f32 %v1353_v48 }
 0x659   :  { %v1612_v47 = vpop.eup %1611 }
 0x65a   :  { %1039 = vrot.lane.b32.xlu1 %v1612_v47, %s1798_s9 }
 0x65b   :  { %v1614_v49 = vpop.eup %1613 }
 0x65c   :  { %v1033_v50 = vadd.f32 1.0, %v1614_v49 }
 0x65e   :  { %1615 = vrcp.f32 %v1033_v50 }
 0x668   :  { %v1616_v51 = vpop.eup %1615 }
 0x669   :  { %v1037_v54 = vmul.f32 %v1616_v51, %v872_v36 }
 0x6cc   :  { %v1040_v52 = vpop.permute.xlu1 %1039 }
 0x6cd   :  { %v1042_v53 = vmul.f32 %v1616_v51, %v1040_v52 }
 0x6cf   :  { %1044 = vrot.lane.b32.xlu0 %v1042_v53, %s1797_s20 }
 0x741   :  { %v1045_v55 = vpop.permute.xlu0 %1044 }
 0x742   :  { %v1047_v56 = vadd.f32 %v1045_v55, %v1037_v54 }
 0x744   :  { %1617 = vtanh.f32 %v1047_v56 }
 0x74e   :  { %v1618_v63 = vpop.eup %1617 }
 0x74f   :  { %1050 = vrot.lane.b32.xlu1 %v1618_v63, %s1798_s9 }
 0x7c1   :  { %v1051_v0 = vpop.permute.xlu1 %1050 }
 0x7c2   :  { %v1053_v1 = vmul.f32 %v1616_v51, %v1051_v0 }
 0x7c4   :  { %1066 = vrot.lane.b32.xlu0 %v1053_v1, %s1797_s20 }
 0x836   :  { %v1067_v2 = vpop.permute.xlu0 %1066 }
 0x837   :  { %1509 = vmatmul.mubr.msk.f32.vlgmr.msra.gmra.mrb[10].mxu0 %vm693_vm6, %v1067_v2 }
 0x90a   :  { %v1136_v6 = vpop.f32.mrb[10].mxu0 }
 0x90b   :  { %v1137_v7 = vadd.f32 %v1354_v5, %v1136_v6  ;;  %v1510_v8 = vpop.f32.mrb[11].mxu0 }
 0x90d   :  { %v1140_v9 = vmax.f32 %v1137_v7, 0.0 }
 0x90f   :  { %1516 = vmatmul.mubr.msk.f32.vlgmr.msra.gmra.mrb[10].mxu1 %vm405_vm4, %v1140_v9 }
 0x910   :  { %1520 = vmatprep.mubr.msk.f32.mxu1 %vm1795_vm5, %v1796_v46  ;;  %1519 = vmatpush3.msra.mxu1 %v1224_v10 }
 0x9e2   :  { %v1219_v12 = vpop.f32.mrb[10].mxu1 }
 0x9e3   :  { %v1220_v13 = vadd.f32 %v1356_v11, %v1219_v12  ;;  %v1517_v14 = vpop.f32.mrb[11].mxu1 }
 0x9e5   :  { %v1223_v15 = vmax.f32 %v1220_v13, 0.0 }
 0x9e7   :  { %1521 = vmatmul.mubr.msk.f32.vlgmr.msra.gmra.mrb[12].mxu1 %vm1232_vm8, %v1223_v15 }
 0xaba   :  { %v1302_v46 = vpop.f32.mrb[12].mxu1 }
 0xabb   :  { %v1303_v17 = vadd.f32 %v1358_v16, %v1302_v46  ;;  %v1522_v18 = vpop.f32.mrb[13].mxu1 }
 0xabd   :  { %1307 = vst.msk [vmem:[#allocation13] sm:$0x3] %vm1306_vm9, %v1303_v17 }
 0xabe   :  { %1762 = shalt.err (!%p1759_p10)
}
 0xabf   :  { %s1763_s5 = scalar_lea.hbm %s2125_s16, 32 }
 0xac0   :  { %p1764_p11 = scmp.ne.s32.totalorder %s2125_s16, %s1763_s5  ;;  %p1767_p12 = scmp.lt.u32.totalorder %s1763_s5, %s2125_s16 }
 0xac2   :  { %p1769_p13 = pnand %p1767_p12, %p1764_p11 }
 0xac4   :  { %1772 = shalt.err (!%p1769_p13)
}
 0xac5   :  { %1317 = dma.vmem_to_hbm [thread:$0]  %s1315_s22, 32, %s2125_s16, [#allocation4]  }
 0xac6   :  { %1781 = dma.done.wait [#allocation4], 32  }
 0xac7   :  { %1782 = vsyncadd [#allocation4], 4294967264 }
 0xac8   :  { %1321 = vsyncpa [#allocation3], 1 }
 0xac9   :  { %1322 = vsyncpa [#allocation6], 1 }
 0xaca   :  { %1323 = vsyncpa [#allocation9], 1 }
 0xacb   :  { %1324 = vsyncpa [#allocation12], 1 }
 0xacc   :  { %1325 = vsyncpa [#allocation4], 1 }

</bundles_post_ra>
